<compile_context>
chip_gen: v7x
topology: tpu7x:2x2x1
jax: 0.10.0
libtpu: 0.0.40
codegen_flags: <defaults>
</compile_context>

<pallas_src>
import jax
import jax.numpy as jnp
from jax.experimental import pallas as pl
from jax.experimental.pallas import tpu as pltpu

_PAD_LOGIT = -1.0e4  # exp(-|pad|) == 0  =>  bce == 0, sigmoid ~= 0, sums unchanged


def _make_loss_kernel(weights, rows, lanes, acc_w, rem, ragged):
    """weights = (w_bce, w_iou, w_dice, w_fscore, w_focal, w_mse) -- static."""
    w_b, w_i, w_d, w_f, w_o, w_m = weights
    need_img = (w_i != 0.0) or (w_d != 0.0) or (w_f != 0.0)
    need_d = (w_o != 0.0) or (w_m != 0.0)
    need_p = need_img or need_d
    need_bce = (w_b != 0.0) or (w_o != 0.0)
    n_fold = lanes // acc_w

    def fold(v):
        # Fold (rows, lanes) -> (rows, acc_w) with a balanced add tree over
        # vreg-aligned static lane slices (pure VALU, no acc vld/vst per slice).
        if n_fold == 1:
            return v
        parts = [v[:, i * acc_w:(i + 1) * acc_w] for i in range(n_fold)]
        while len(parts) > 1:
            nxt = [parts[i] + parts[i + 1] for i in range(0, len(parts) - 1, 2)]
            if len(parts) % 2:
                nxt.append(parts[-1])
            parts = nxt
        return parts[0]

    def kernel(x_ref, t_ref, out_ref, acc_tp, acc_p, acc_t, acc_cb):
        k = pl.program_id(0)

        @pl.when(k == 0)
        def _init():
            acc_tp[...] = jnp.zeros_like(acc_tp)
            acc_p[...] = jnp.zeros_like(acc_p)
            acc_t[...] = jnp.zeros_like(acc_t)
            acc_cb[...] = jnp.zeros_like(acc_cb)

        x = x_ref[...].astype(jnp.float32)
        t = t_ref[...].astype(jnp.float32)

        if ragged:
            # Only the last block has a ragged tail; elsewhere the mask is
            # all-true (two VALU selects per element, free under EUP slack).
            lane_idx = jax.lax.broadcasted_iota(jnp.int32, (rows, lanes), 1)
            not_last = k < pl.num_programs(0) - 1
            valid = jnp.logical_or(lane_idx < rem, not_last)
            x = jnp.where(valid, x, _PAD_LOGIT)
            t = jnp.where(valid, t, 0.0)

        # One exp per element, shared by BCE and sigmoid (EUP is critical unit).
        e = jnp.exp(-jnp.abs(x))

        if need_p:
            a = 1.0 + e
            r0 = pl.reciprocal(a, approx=True)   # EUP approx reciprocal
            r = r0 * (2.0 - a * r0)              # one Newton step (VALU) -> ~fp32
            p = jnp.where(x >= 0.0, r, 1.0 - r)  # sigmoid(x)
        if need_bce:
            bce = jnp.maximum(x, 0.0) - x * t + jnp.log1p(e)
        if need_d:
            d = p - t
            d2 = d * d

        # Elementwise-weighted sum of the "global mean" losses (BCE/Focal/MSE).
        comb = None
        if w_b != 0.0:
            comb = w_b * bce
        if w_o != 0.0:
            foc = (100.0 * w_o) * (bce * d2)
            comb = foc if comb is None else comb + foc
        if w_m != 0.0:
            ms = w_m * d2
            comb = ms if comb is None else comb + ms

        # Narrow accumulators: fold to 128 lanes first, then one acc RMW each.
        if comb is not None:
            acc_cb[...] += fold(comb)
        if need_img:
            acc_tp[...] += fold(p * t)
            acc_p[...] += fold(p)
            acc_t[...] += fold(t)

        @pl.when(k == pl.num_programs(0) - 1)
        def _finalize():
            # Single XLU lane-reduce per accumulator, once at the end.
            out_ref[:, 0:1] = jnp.sum(acc_tp[...], axis=1, keepdims=True)
            out_ref[:, 1:2] = jnp.sum(acc_p[...], axis=1, keepdims=True)
            out_ref[:, 2:3] = jnp.sum(acc_t[...], axis=1, keepdims=True)
            out_ref[:, 3:4] = jnp.sum(acc_cb[...], axis=1, keepdims=True)

    return kernel


class LossFactory:
    """Pallas equivalent of Loss_factory.forward for elementwise/reduction losses."""

    SUPPORTED = "bidfom"

    def __init__(self, config):
        if config["lw"] == "":
            lw = [1.0] * len(config["loss"])
        else:
            lw = [float(w) for w in config["lw"].split(",")]
        assert len(config["loss"]) == len(lw), "Length of loss and loss_weight should be equal."
        for name in config["loss"]:
            assert name in self.SUPPORTED, f"loss '{name}' not implemented in the Pallas kernel"
        self.losses = config["loss"]
        self.lw = lw
        wmap = {c: 0.0 for c in self.SUPPORTED}
        for name, w in zip(self.losses, self.lw):
            wmap[name] += float(w)
        self.weights = tuple(wmap[c] for c in self.SUPPORTED)
        self._forward_jit = jax.jit(self._forward)

    def __call__(self, preds, target, config=None):
        return self._forward_jit(preds["final"], target)

    def _forward(self, x, target):
        w_b, w_i, w_d, w_f, w_o, w_m = self.weights
        if not any(w != 0.0 for w in self.weights):
            return jnp.float32(0.0)

        B, C, H, W = x.shape
        N = C * H * W
        total = B * N

        # Pack each image into SUB consecutive sublane rows so vregs stay
        # occupied even for tiny batches.  Largest of {8,4,2,1} dividing N.
        SUB = 1
        for s in (8, 4, 2):
            if N % s == 0:
                SUB = s
                break
        # TODO(synk): for odd N with small B, an in-kernel row-tail mask would
        # allow SUB=8 always; sublane occupancy is low in that corner case.
        ROWS = B * SUB
        M = N // SUB

        # Free reshapes (contiguous row-major); no dtype cast, no host-side pad.
        x2 = x.reshape(ROWS, M)
        t2 = target.reshape(ROWS, M)

        # Lane tiling: blocks of (ROWS, lanes) with lanes a multiple of 128 and
        # <= ~4 MiB of f32 per input block.  Accumulators are only 128 lanes
        # wide, so big blocks cost almost no extra VMEM beyond double-buffering.
        if M <= 128:
            lanes = M                      # block == full lane extent
        else:
            col_bytes = ROWS * 4 * 128     # f32 bytes per input per 128-lane group
            g_cap = max(1, (4 << 20) // col_bytes)
            g = max(1, min(g_cap, M // 128, 128))
            if M % 128 == 0:
                # Prefer a nearby divisor of the tile count so the last block
                # is full (avoids the in-kernel tail mask entirely).
                m_tiles = M // 128
                for cand in range(g, max(1, g // 2) - 1, -1):
                    if m_tiles % cand == 0:
                        g = cand
                        break
            lanes = g * 128
        steps = pl.cdiv(M, lanes)
        rem = M - (steps - 1) * lanes      # valid width of the last block
        ragged = rem != lanes
        acc_w = min(lanes, 128)

        kernel = _make_loss_kernel(self.weights, ROWS, lanes, acc_w, rem, ragged)

        x_bytes = jnp.dtype(x2.dtype).itemsize
        t_bytes = jnp.dtype(t2.dtype).itemsize
        block_in_bytes = ROWS * lanes * (x_bytes + t_bytes)
        vmem_need = (2 * block_in_bytes          # double-buffered inputs
                     + 4 * ROWS * acc_w * 4      # narrow accumulators
                     + ROWS * 4 * 4)             # output block
        vmem_limit = int(min(max(2 * vmem_need, 16 << 20), 48 << 20))

        cost = pl.CostEstimate(
            flops=int(25 * total),
            transcendentals=int(3 * total),
            bytes_accessed=int(total * (x_bytes + t_bytes)),
        )

        res = pl.pallas_call(
            kernel,
            out_shape=jax.ShapeDtypeStruct((ROWS, 4), jnp.float32),
            grid=(steps,),
            in_specs=[
                pl.BlockSpec((ROWS, lanes), lambda k: (0, k)),
                pl.BlockSpec((ROWS, lanes), lambda k: (0, k)),
            ],
            out_specs=pl.BlockSpec((ROWS, 4), lambda k: (0, 0)),
            scratch_shapes=[pltpu.VMEM((ROWS, acc_w), jnp.float32)] * 4,
            compiler_params=pltpu.CompilerParams(
                dimension_semantics=("arbitrary",),
                vmem_limit_bytes=vmem_limit,
            ),
            cost_estimate=cost,
        )(x2, t2)

        # Tiny O(B) epilogue: combine per-row partial sums into the ratios.
        sums = res.reshape(B, SUB, 4).sum(axis=1)   # (B, 4)
        tp_s = sums[:, 0]
        p_s = sums[:, 1]
        t_s = sums[:, 2]
        comb_s = sums[:, 3]

        eps = 1e-8  # guards 0/0 for images with empty targets (PyTorch would NaN)
        loss = jnp.float32(0.0)
        if (w_b != 0.0) or (w_o != 0.0) or (w_m != 0.0):
            loss = loss + jnp.sum(comb_s) / total
        if w_i != 0.0:
            inter = tp_s
            union = t_s + p_s - inter
            loss = loss + w_i * (1.0 - jnp.mean(inter / (union + eps)))
        if w_d != 0.0:
            loss = loss + w_d * (1.0 - jnp.mean(2.0 * (tp_s + 1.0) / (p_s + t_s + 1.0)))
        if w_f != 0.0:
            loss = loss + w_f * (1.0 - jnp.mean(1.3 * tp_s / (p_s + 0.3 * t_s + eps)))
        return loss


def _ref_loss(x, t, losses, lw):
    """Pure-JAX reference mirroring the PyTorch code, for verification."""
    x = x.astype(jnp.float32)
    t = t.astype(jnp.float32)
    p = jax.nn.sigmoid(x)
    bce_elem = jnp.maximum(x, 0.0) - x * t + jnp.log1p(jnp.exp(-jnp.abs(x)))
    tp_sum = jnp.sum(p * t, axis=(1, 2, 3))
    p_sum = jnp.sum(p, axis=(1, 2, 3))
    t_sum = jnp.sum(t, axis=(1, 2, 3))
    total = 0.0
    for name, w in zip(losses, lw):
        if name == "b":
            total += w * jnp.mean(bce_elem)
        elif name == "i":
            inter = tp_sum
            union = t_sum + p_sum - inter
            total += w * (1.0 - jnp.mean(inter / union))
        elif name == "d":
            total += w * (1.0 - jnp.mean(2.0 * (tp_sum + 1.0) / (p_sum + t_sum + 1.0)))
        elif name == "f":
            total += w * (1.0 - jnp.mean(1.3 * tp_sum / (p_sum + 0.3 * t_sum)))
        elif name == "o":
            total += w * jnp.mean(bce_elem * ((t - p) ** 2) * 100.0)
        elif name == "m":
            total += w * jnp.mean((p - t) ** 2)
    return total


if __name__ == "__main__":
    key = jax.random.PRNGKey(0)

    config = {"loss": "bidfom", "lw": "1,0.5,1,1,0.25,1"}
    loss_fn = LossFactory(config)

    shapes = [
        (2, 4, 16, 16),   # canonical small case: one full (16, 128) block
        (2, 4, 32, 32),   # exercises the 128-lane fold path (n_fold = 4)
        (2, 3, 20, 20),   # exercises the ragged last-block mask (rem = 22)
    ]
    for idx, shp in enumerate(shapes):
        k1, k2 = jax.random.split(jax.random.fold_in(key, idx))
        preds_final = jax.random.normal(k1, shp, dtype=jnp.float32)
        target = (jax.random.uniform(k2, shp) > 0.5).astype(jnp.float32)

        loss = loss_fn({"final": preds_final}, target, config)
        loss = jax.block_until_ready(loss)
        ref = jax.block_until_ready(_ref_loss(preds_final, target, config["loss"], loss_fn.lw))

        assert jnp.isfinite(loss), (shp, float(loss))
        err = abs(float(loss) - float(ref))
        assert err < 1e-3 * (1.0 + abs(float(ref))), (shp, float(loss), float(ref), err)

    print("KERNEL_OK")
</pallas_src>

<mosaic_0001>
module attributes {stable_mosaic.version = 11 : i64} {
  func.func @kernel(%arg0: i32, %arg1: memref<16x128xf32, #tpu.memory_space<vmem>>, %arg2: memref<16x128xf32, #tpu.memory_space<vmem>>, %arg3: memref<16x4xf32, #tpu.memory_space<vmem>>, %arg4: memref<16x128xf32, #tpu.memory_space<vmem>>, %arg5: memref<16x128xf32, #tpu.memory_space<vmem>>, %arg6: memref<16x128xf32, #tpu.memory_space<vmem>>, %arg7: memref<16x128xf32, #tpu.memory_space<vmem>>) attributes {dimension_semantics = [#tpu.dimension_semantics<arbitrary>], iteration_bounds = array<i64: 1>, scalar_prefetch = 0 : i64, scratch_operands = 4 : i64, tpu.core_type = #tpu.core_type<tc>, window_params = [{transform_indices = @transform_0, window_bounds = array<i64: 16, 128>}, {transform_indices = @transform_1, window_bounds = array<i64: 16, 128>}, {pipeline_mode = #tpu.pipeline_mode<synchronous>, transform_indices = @transform_2, window_bounds = array<i64: 16, 4>}]} {
    %c0_i32 = arith.constant 0 : i32
    %0 = arith.cmpi eq, %arg0, %c0_i32 : i32
    %1 = arith.extui %0 : i1 to i32
    %c0_i32_0 = arith.constant 0 : i32
    %2 = arith.cmpi ne, %1, %c0_i32_0 : i32
    scf.if %2 {
      %cst_30 = arith.constant 0.000000e+00 : f32
      %54 = vector.broadcast %cst_30 : f32 to vector<16x128xf32>
      %c0_31 = arith.constant 0 : index
      %c0_32 = arith.constant 0 : index
      %55 = vector.load %arg4[%c0_31, %c0_32] : memref<16x128xf32, #tpu.memory_space<vmem>>, vector<16x128xf32>
      tpu.vector_store %arg4[%c0_31, %c0_32], %54 {strides = array<i32>} : memref<16x128xf32, #tpu.memory_space<vmem>>, vector<16x128xf32>,
      %cst_33 = arith.constant 0.000000e+00 : f32
      %56 = vector.broadcast %cst_33 : f32 to vector<16x128xf32>
      %c0_34 = arith.constant 0 : index
      %c0_35 = arith.constant 0 : index
      %57 = vector.load %arg5[%c0_34, %c0_35] : memref<16x128xf32, #tpu.memory_space<vmem>>, vector<16x128xf32>
      tpu.vector_store %arg5[%c0_34, %c0_35], %56 {strides = array<i32>} : memref<16x128xf32, #tpu.memory_space<vmem>>, vector<16x128xf32>,
      %cst_36 = arith.constant 0.000000e+00 : f32
      %58 = vector.broadcast %cst_36 : f32 to vector<16x128xf32>
      %c0_37 = arith.constant 0 : index
      %c0_38 = arith.constant 0 : index
      %59 = vector.load %arg6[%c0_37, %c0_38] : memref<16x128xf32, #tpu.memory_space<vmem>>, vector<16x128xf32>
      tpu.vector_store %arg6[%c0_37, %c0_38], %58 {strides = array<i32>} : memref<16x128xf32, #tpu.memory_space<vmem>>, vector<16x128xf32>,
      %cst_39 = arith.constant 0.000000e+00 : f32
      %60 = vector.broadcast %cst_39 : f32 to vector<16x128xf32>
      %c0_40 = arith.constant 0 : index
      %c0_41 = arith.constant 0 : index
      %61 = vector.load %arg7[%c0_40, %c0_41] : memref<16x128xf32, #tpu.memory_space<vmem>>, vector<16x128xf32>
      tpu.vector_store %arg7[%c0_40, %c0_41], %60 {strides = array<i32>} : memref<16x128xf32, #tpu.memory_space<vmem>>, vector<16x128xf32>,
    } else {
    }
    %c0 = arith.constant 0 : index
    %c0_1 = arith.constant 0 : index
    %3 = vector.load %arg1[%c0, %c0_1] : memref<16x128xf32, #tpu.memory_space<vmem>>, vector<16x128xf32>
    %c0_2 = arith.constant 0 : index
    %c0_3 = arith.constant 0 : index
    %4 = vector.load %arg2[%c0_2, %c0_3] : memref<16x128xf32, #tpu.memory_space<vmem>>, vector<16x128xf32>
    %5 = math.absf %3 : vector<16x128xf32>
    %cst = arith.constant 0.000000e+00 : f32
    %6 = vector.broadcast %cst : f32 to vector<16x128xf32>
    %7 = arith.subf %6, %5 : vector<16x128xf32>
    %8 = math.exp %7 : vector<16x128xf32>
    %cst_4 = arith.constant 1.000000e+00 : f32
    %9 = vector.broadcast %cst_4 : f32 to vector<16x128xf32>
    %10 = arith.addf %9, %8 : vector<16x128xf32>
    %11 = tpu.reciprocal %10 {approx = true} : vector<16x128xf32> -> vector<16x128xf32>
    %12 = arith.mulf %10, %11 : vector<16x128xf32>
    %cst_5 = arith.constant 2.000000e+00 : f32
    %13 = vector.broadcast %cst_5 : f32 to vector<16x128xf32>
    %14 = arith.subf %13, %12 : vector<16x128xf32>
    %15 = arith.mulf %11, %14 : vector<16x128xf32>
    %cst_6 = arith.constant 0.000000e+00 : f32
    %16 = vector.broadcast %cst_6 : f32 to vector<16x128xf32>
    %17 = arith.cmpf oge, %3, %16 : vector<16x128xf32>
    %cst_7 = arith.constant 1.000000e+00 : f32
    %18 = vector.broadcast %cst_7 : f32 to vector<16x128xf32>
    %19 = arith.subf %18, %15 : vector<16x128xf32>
    %20 = arith.select %17, %15, %19 : vector<16x128xi1>, vector<16x128xf32>
    %cst_8 = arith.constant 0.000000e+00 : f32
    %21 = vector.broadcast %cst_8 : f32 to vector<16x128xf32>
    %22 = arith.maximumf %3, %21 : vector<16x128xf32>
    %23 = arith.mulf %3, %4 : vector<16x128xf32>
    %24 = arith.subf %22, %23 : vector<16x128xf32>
    %25 = math.log1p %8 : vector<16x128xf32>
    %26 = arith.addf %24, %25 : vector<16x128xf32>
    %27 = arith.subf %20, %4 : vector<16x128xf32>
    %28 = arith.mulf %27, %27 : vector<16x128xf32>
    %cst_9 = arith.constant 1.000000e+00 : f32
    %29 = vector.broadcast %cst_9 : f32 to vector<16x128xf32>
    %30 = arith.mulf %29, %26 : vector<16x128xf32>
    %31 = arith.mulf %26, %28 : vector<16x128xf32>
    %cst_10 = arith.constant 2.500000e+01 : f32
    %32 = vector.broadcast %cst_10 : f32 to vector<16x128xf32>
    %33 = arith.mulf %32, %31 : vector<16x128xf32>
    %34 = arith.addf %30, %33 : vector<16x128xf32>
    %cst_11 = arith.constant 1.000000e+00 : f32
    %35 = vector.broadcast %cst_11 : f32 to vector<16x128xf32>
    %36 = arith.mulf %35, %28 : vector<16x128xf32>
    %37 = arith.addf %34, %36 : vector<16x128xf32>
    %c0_12 = arith.constant 0 : index
    %c0_13 = arith.constant 0 : index
    %38 = vector.load %arg7[%c0_12, %c0_13] : memref<16x128xf32, #tpu.memory_space<vmem>>, vector<16x128xf32>
    %39 = arith.addf %38, %37 : vector<16x128xf32>
    %c0_14 = arith.constant 0 : index
    %c0_15 = arith.constant 0 : index
    %40 = vector.load %arg7[%c0_14, %c0_15] : memref<16x128xf32, #tpu.memory_space<vmem>>, vector<16x128xf32>
    tpu.vector_store %arg7[%c0_14, %c0_15], %39 {strides = array<i32>} : memref<16x128xf32, #tpu.memory_space<vmem>>, vector<16x128xf32>,
    %c0_16 = arith.constant 0 : index
    %c0_17 = arith.constant 0 : index
    %41 = vector.load %arg4[%c0_16, %c0_17] : memref<16x128xf32, #tpu.memory_space<vmem>>, vector<16x128xf32>
    %42 = arith.mulf %20, %4 : vector<16x128xf32>
    %43 = arith.addf %41, %42 : vector<16x128xf32>
    %c0_18 = arith.constant 0 : index
    %c0_19 = arith.constant 0 : index
    %44 = vector.load %arg4[%c0_18, %c0_19] : memref<16x128xf32, #tpu.memory_space<vmem>>, vector<16x128xf32>
    tpu.vector_store %arg4[%c0_18, %c0_19], %43 {strides = array<i32>} : memref<16x128xf32, #tpu.memory_space<vmem>>, vector<16x128xf32>,
    %c0_20 = arith.constant 0 : index
    %c0_21 = arith.constant 0 : index
    %45 = vector.load %arg5[%c0_20, %c0_21] : memref<16x128xf32, #tpu.memory_space<vmem>>, vector<16x128xf32>
    %46 = arith.addf %45, %20 : vector<16x128xf32>
    %c0_22 = arith.constant 0 : index
    %c0_23 = arith.constant 0 : index
    %47 = vector.load %arg5[%c0_22, %c0_23] : memref<16x128xf32, #tpu.memory_space<vmem>>, vector<16x128xf32>
    tpu.vector_store %arg5[%c0_22, %c0_23], %46 {strides = array<i32>} : memref<16x128xf32, #tpu.memory_space<vmem>>, vector<16x128xf32>,
    %c0_24 = arith.constant 0 : index
    %c0_25 = arith.constant 0 : index
    %48 = vector.load %arg6[%c0_24, %c0_25] : memref<16x128xf32, #tpu.memory_space<vmem>>, vector<16x128xf32>
    %49 = arith.addf %48, %4 : vector<16x128xf32>
    %c0_26 = arith.constant 0 : index
    %c0_27 = arith.constant 0 : index
    %50 = vector.load %arg6[%c0_26, %c0_27] : memref<16x128xf32, #tpu.memory_space<vmem>>, vector<16x128xf32>
    tpu.vector_store %arg6[%c0_26, %c0_27], %49 {strides = array<i32>} : memref<16x128xf32, #tpu.memory_space<vmem>>, vector<16x128xf32>,
    %c0_i32_28 = arith.constant 0 : i32
    %51 = arith.cmpi eq, %arg0, %c0_i32_28 : i32
    %52 = arith.extui %51 : i1 to i32
    %c0_i32_29 = arith.constant 0 : i32
    %53 = arith.cmpi ne, %52, %c0_i32_29 : i32
    scf.if %53 {
      %c0_30 = arith.constant 0 : index
      %c0_31 = arith.constant 0 : index
      %54 = vector.load %arg4[%c0_30, %c0_31] : memref<16x128xf32, #tpu.memory_space<vmem>>, vector<16x128xf32>
      %cst_32 = arith.constant dense<0.000000e+00> : vector<16xf32>
      %55 = vector.multi_reduction <add>, %54, %cst_32 [1] : vector<16x128xf32> to vector<16xf32>
      %56 = vector.shape_cast %55 : vector<16xf32> to vector<16x1xf32>
      %c0_33 = arith.constant 0 : index
      %c0_34 = arith.constant 0 : index
      %57 = vector.load %arg3[%c0_33, %c0_34] : memref<16x4xf32, #tpu.memory_space<vmem>>, vector<16x1xf32>
      tpu.vector_store %arg3[%c0_33, %c0_34], %56 {strides = array<i32>} : memref<16x4xf32, #tpu.memory_space<vmem>>, vector<16x1xf32>,
      %c0_35 = arith.constant 0 : index
      %c0_36 = arith.constant 0 : index
      %58 = vector.load %arg5[%c0_35, %c0_36] : memref<16x128xf32, #tpu.memory_space<vmem>>, vector<16x128xf32>
      %cst_37 = arith.constant dense<0.000000e+00> : vector<16xf32>
      %59 = vector.multi_reduction <add>, %58, %cst_37 [1] : vector<16x128xf32> to vector<16xf32>
      %60 = vector.shape_cast %59 : vector<16xf32> to vector<16x1xf32>
      %c0_38 = arith.constant 0 : index
      %c1 = arith.constant 1 : index
      %61 = vector.load %arg3[%c0_38, %c1] : memref<16x4xf32, #tpu.memory_space<vmem>>, vector<16x1xf32>
      tpu.vector_store %arg3[%c0_38, %c1], %60 {strides = array<i32>} : memref<16x4xf32, #tpu.memory_space<vmem>>, vector<16x1xf32>,
      %c0_39 = arith.constant 0 : index
      %c0_40 = arith.constant 0 : index
      %62 = vector.load %arg6[%c0_39, %c0_40] : memref<16x128xf32, #tpu.memory_space<vmem>>, vector<16x128xf32>
      %cst_41 = arith.constant dense<0.000000e+00> : vector<16xf32>
      %63 = vector.multi_reduction <add>, %62, %cst_41 [1] : vector<16x128xf32> to vector<16xf32>
      %64 = vector.shape_cast %63 : vector<16xf32> to vector<16x1xf32>
      %c0_42 = arith.constant 0 : index
      %c2 = arith.constant 2 : index
      %65 = vector.load %arg3[%c0_42, %c2] : memref<16x4xf32, #tpu.memory_space<vmem>>, vector<16x1xf32>
      tpu.vector_store %arg3[%c0_42, %c2], %64 {strides = array<i32>} : memref<16x4xf32, #tpu.memory_space<vmem>>, vector<16x1xf32>,
      %c0_43 = arith.constant 0 : index
      %c0_44 = arith.constant 0 : index
      %66 = vector.load %arg7[%c0_43, %c0_44] : memref<16x128xf32, #tpu.memory_space<vmem>>, vector<16x128xf32>
      %cst_45 = arith.constant dense<0.000000e+00> : vector<16xf32>
      %67 = vector.multi_reduction <add>, %66, %cst_45 [1] : vector<16x128xf32> to vector<16xf32>
      %68 = vector.shape_cast %67 : vector<16xf32> to vector<16x1xf32>
      %c0_46 = arith.constant 0 : index
      %c3 = arith.constant 3 : index
      %69 = vector.load %arg3[%c0_46, %c3] : memref<16x4xf32, #tpu.memory_space<vmem>>, vector<16x1xf32>
      tpu.vector_store %arg3[%c0_46, %c3], %68 {strides = array<i32>} : memref<16x4xf32, #tpu.memory_space<vmem>>, vector<16x1xf32>,
    } else {
    }
    return
  }
  func.func @transform_0(%arg0: i32) -> (i32, i32) {
    %c0_i32 = arith.constant 0 : i32
    %c0_i32_0 = arith.constant 0 : i32
    return %c0_i32, %arg0 : i32, i32
  }
  func.func @transform_1(%arg0: i32) -> (i32, i32) {
    %c0_i32 = arith.constant 0 : i32
    %c0_i32_0 = arith.constant 0 : i32
    return %c0_i32, %arg0 : i32, i32
  }
  func.func @transform_2(%arg0: i32) -> (i32, i32) {
    %c0_i32 = arith.constant 0 : i32
    %c0_i32_0 = arith.constant 0 : i32
    %c0_i32_1 = arith.constant 0 : i32
    return %c0_i32, %c0_i32_0 : i32, i32
  }
}

</mosaic_0001>

<bundles_post_ra>
// kernel: _forward.1
= control target key start
LH: loop header
LB: loop body
LE: loop exit
PB: predicated region body
PF: predicated region fallthrough
CT: control target
= control target key end

     0   :  { %vm124_vm4 = vcmask 7168   ;;  %vm133_vm5 = vcmask 15368   ;;  %vm142_vm6 = vcmask 23568   ;;  %vm151_vm7 = vcmask 31768   ;;  %s239_s1 = inlined_call_operand.vmem [shape: f32[16,128], index: 1, kind: input, shape index: {}]   ;;  %s240_s0 = inlined_call_operand.vmem [shape: f32[16,128], index: 0, kind: input, shape index: {}]   ;;  %s241_s2 = inlined_call_operand.vmem [shape: f32[16,4], index: 2, kind: output, shape index: {}]  }
   0x1   :  { %v25_v0 = vld [vmem:[%s239_s1] sm:$0xff]  ;;  %v194_v2 = vld [vmem:[%s239_s1 + $0x8] sm:$0xff] }
   0x2   :  { %v23_v1 = vld [vmem:[%s240_s0] sm:$0xff]  ;;  %138 = vadd.xlane.f32.xlu0 %v25_v0  ;;  %140 = vadd.xlane.f32.xlu1 %v194_v2  ;;  %v24_v4 = vld [vmem:[%s240_s0 + $0x8] sm:$0xff] }
   0x3   :  { %v27_v3 = vand.u32 2147483647, %v23_v1  ;;  %v28_v5 = vand.u32 2147483647, %v24_v4  ;;  %v53_v24 = vmul.f32 %v25_v0, %v23_v1  ;;  %v54_v25 = vmul.f32 %v194_v2, %v24_v4 }
   0x4   :  { %v51_v27 = vmax.f32 %v23_v1, 0.0  ;;  %v52_v30 = vmax.f32 %v24_v4, 0.0  ;;  %vm45_vm2 = vcmp.ge.f32.partialorder %v23_v1, 0.0  ;;  %vm46_vm3 = vcmp.ge.f32.partialorder %v24_v4, 0.0 }
   0x5   :  { %v29_v6 = vsub.f32 0.0, %v27_v3  ;;  %v30_v7 = vsub.f32 0.0, %v28_v5 }
   0x6   :  { %v55_v40 = vsub.f32 %v51_v27, %v53_v24  ;;  %v56_v42 = vsub.f32 %v52_v30, %v54_v25 }
   0x7   :  { %v31_v8 = vmul.f32 1.442695, %v29_v6  ;;  %v33_v9 = vmul.f32 1.442695, %v30_v7 }
   0x9   :  { %158 = vpow2.f32 %v31_v8 }
   0xa   :  { %160 = vpow2.f32 %v33_v9 }
  0x13   :  { %v159_v10 = vpop.eup %158 }
  0x14   :  { %v161_v11 = vpop.eup %160  ;;  %v35_v12 = vadd.f32 1.0, %v159_v10  ;;  %v60_v14 = vmul.f32 -0.5, %v159_v10  ;;  %v63_v17 = vand.u32 2147483647, %v159_v10 }
  0x15   :  { %v36_v13 = vadd.f32 1.0, %v161_v11  ;;  %v69_v15 = vmul.f32 -0.5, %v161_v11  ;;  %v72_v22 = vand.u32 2147483647, %v161_v11 }
  0x16   :  { %162 = vrcp.f32 %v35_v12  ;;  %v61_v16 = vadd.f32 1.0, %v60_v14  ;;  %vm201_vm0 = vcmp.lt.f32.partialorder %v63_v17, 0.0004427343 }
  0x17   :  { %164 = vrcp.f32 %v36_v13  ;;  %v70_v19 = vadd.f32 1.0, %v69_v15  ;;  %vm205_vm1 = vcmp.lt.f32.partialorder %v72_v22, 0.0004427343 }
  0x18   :  { %166 = vlog2.f32 %v36_v13  ;;  %v62_v31 = vmul.f32 %v159_v10, %v61_v16 }
  0x19   :  { %168 = vlog2.f32 %v35_v12  ;;  %v71_v35 = vmul.f32 %v161_v11, %v70_v19 }
  0x20   :  { %v163_v18 = vpop.eup %162 }
  0x21   :  { %v165_v20 = vpop.eup %164  ;;  %v39_v21 = vmul.f32 %v163_v18, %v35_v12 }
  0x22   :  { %v167_v23 = vpop.eup %166  ;;  %v40_v26 = vmul.f32 %v165_v20, %v36_v13 }
  0x23   :  { %v169_v28 = vpop.eup %168  ;;  %v41_v29 = vsub.f32 2.0, %v39_v21  ;;  %v68_v34 = vmul.f32 0.6931472, %v167_v23 }
  0x24   :  { %v42_v33 = vsub.f32 2.0, %v40_v26  ;;  %v59_v36 = vmul.f32 0.6931472, %v169_v28 }
  0x25   :  { %v43_v37 = vmul.f32 %v163_v18, %v41_v29  ;;  %v74_v45 = vsel %vm205_vm1, %v71_v35, %v68_v34 }
  0x26   :  { %v44_v39 = vmul.f32 %v165_v20, %v42_v33  ;;  %v65_v43 = vsel %vm201_vm0, %v62_v31, %v59_v36  ;;  %v76_v51 = vadd.f32 %v74_v45, %v56_v42 }
  0x27   :  { %v47_v41 = vsub.f32 1.0, %v43_v37  ;;  %v75_v49 = vadd.f32 %v65_v43, %v55_v40 }
  0x28   :  { %v48_v44 = vsub.f32 1.0, %v44_v39 }
  0x29   :  { %v49_v46 = vsel %vm45_vm2, %v43_v37, %v47_v41 }
  0x2a   :  { %v97_v47 = vmul.f32 %v49_v46, %v25_v0  ;;  %129 = vadd.xlane.f32.xlu1 %v49_v46  ;;  %v50_v48 = vsel %vm46_vm3, %v44_v39, %v48_v44  ;;  %v77_v50 = vsub.f32 %v49_v46, %v25_v0 }
  0x2b   :  { %v78_v52 = vsub.f32 %v50_v48, %v194_v2  ;;  %v98_v53 = vmul.f32 %v50_v48, %v194_v2 }
  0x2c   :  { %120 = vadd.xlane.f32.xlu0 %v97_v47  ;;  %v79_v54 = vmul.f32 %v77_v50, %v77_v50 }
  0x2d   :  { %v80_v55 = vmul.f32 %v78_v52, %v78_v52 }
  0x2e   :  { %131 = vadd.xlane.f32.xlu1 %v50_v48  ;;  %v81_v56 = vmul.f32 %v79_v54, %v75_v49 }
  0x2f   :  { %v82_v57 = vmul.f32 %v80_v55, %v76_v51 }
  0x30   :  { %122 = vadd.xlane.f32.xlu0 %v98_v53  ;;  %v83_v58 = vmul.f32 25.0, %v81_v56 }
  0x31   :  { %v84_v59 = vmul.f32 25.0, %v82_v57 }
  0x32   :  { %v85_v60 = vadd.f32 %v83_v58, %v75_v49 }
  0x33   :  { %v86_v61 = vadd.f32 %v84_v59, %v76_v51 }
  0x34   :  { %v87_v62 = vadd.f32 %v85_v60, %v79_v54 }
  0x35   :  { %v88_v63 = vadd.f32 %v86_v61, %v80_v55 }
  0x36   :  { %147 = vadd.xlane.f32.xlu0 %v87_v62 }
  0x37   :  { %149 = vadd.xlane.f32.xlu1 %v88_v63 }
  0x8f   :  { %v141_v0 = vpop.xlane.xlu1 %140  ;;  %v139_v1 = vpop.xlane.xlu0 %138 }
  0xb7   :  { %v130_v3 = vpop.xlane.xlu1 %129 }
  0xb9   :  { %v121_v2 = vpop.xlane.xlu0 %120 }
  0xba   :  { %125 = vst.msk [vmem:[%s241_s2] sm:$0xff] %vm124_vm4, %v121_v2 }
  0xbb   :  { %134 = vst.msk [vmem:[%s241_s2] sm:$0xff] %vm133_vm5, %v130_v3  ;;  %v132_v4 = vpop.xlane.xlu1 %131 }
  0xbc   :  { %143 = vst.msk [vmem:[%s241_s2] sm:$0xff] %vm142_vm6, %v139_v1 }
  0xbd   :  { %v123_v5 = vpop.xlane.xlu0 %122 }
  0xbe   :  { %126 = vst.msk [vmem:[%s241_s2 + $0x8] sm:$0xff] %vm124_vm4, %v123_v5 }
  0xbf   :  { %135 = vst.msk [vmem:[%s241_s2 + $0x8] sm:$0xff] %vm133_vm5, %v132_v4 }
  0xc0   :  { %144 = vst.msk [vmem:[%s241_s2 + $0x8] sm:$0xff] %vm142_vm6, %v141_v0 }
  0xc3   :  { %v148_v6 = vpop.xlane.xlu0 %147 }
  0xc4   :  { %v150_v7 = vpop.xlane.xlu1 %149  ;;  %152 = vst.msk [vmem:[%s241_s2] sm:$0xff] %vm151_vm7, %v148_v6 }
  0xc5   :  { %153 = vst.msk [vmem:[%s241_s2 + $0x8] sm:$0xff] %vm151_vm7, %v150_v7 }

</bundles_post_ra>
